<compile_context>
chip_gen: v7x
topology: tpu7x:2x2x1
jax: 0.10.0
libtpu: 0.0.40
codegen_flags: <defaults>
</compile_context>

<pallas_src>
import functools

import jax
import jax.numpy as jnp
from jax.experimental import pallas as pl
from jax.experimental.pallas import tpu as pltpu


def _l_plus_kernel(z_ref, o_ref, *, e):
    i = pl.program_id(0)
    j = pl.program_id(1)

    # j < i (strictly-lower block): do nothing.  The output aliases the input,
    # so HBM already holds Z's lower triangle; we skip both read and write.

    # j > i (strictly-upper block): write zeros; never read the input block.
    @pl.when(j > i)
    def _():
        o_ref[...] = jnp.zeros_like(o_ref)

    # j == i (diagonal block): strict-lower part copied, |diag| + e on the main
    # diagonal, zeros above.  The block is square and its row/col offsets are
    # equal (i*t, i*t), so block-local iotas coincide with the global diagonal
    # -- this also holds for ragged edge blocks produced by the cdiv grid.
    @pl.when(j == i)
    def _():
        z = z_ref[...]
        rows = jax.lax.broadcasted_iota(jnp.int32, z.shape, 0)
        cols = jax.lax.broadcasted_iota(jnp.int32, z.shape, 1)
        diag_val = jnp.abs(z) + jnp.asarray(e, z.dtype)
        o_ref[...] = jnp.where(
            rows > cols, z,
            jnp.where(rows == cols, diag_val, jnp.zeros_like(z)))


def _choose_tile(n):
    # Largest square tile (multiple of (8,128)) strictly smaller than n, so the
    # grid always has >= 2 tiles per axis (both v7x TCs get work).  1024 tiles
    # (16 MiB double-buffered in+out) fit the raised 48 MiB VMEM limit on all
    # generations.  Tiny n (<= 128): one full-array block (always legal).
    for t in (1024, 512, 256, 128):
        if n > t:
            return t
    return n


def _l_plus_impl(z, e=0.01):
    """Pallas TPU implementation of L_plus.forward for a square matrix z."""
    assert z.ndim == 2 and z.shape[0] == z.shape[1], "Z must be square"
    n = z.shape[0]
    t = _choose_tile(n)
    g = pl.cdiv(n, t)

    # Advisory cost hint: reads = g diagonal blocks, writes = diag+upper blocks.
    itemsize = jnp.dtype(z.dtype).itemsize
    bytes_accessed = int((g + g * (g + 1) // 2) * t * t * itemsize)

    kernel = functools.partial(_l_plus_kernel, e=e)
    return pl.pallas_call(
        kernel,
        out_shape=jax.ShapeDtypeStruct((n, n), z.dtype),
        grid_spec=pltpu.PrefetchScalarGridSpec(
            num_scalar_prefetch=0,
            grid=(g, g),
            # Input: always the diagonal block of the current block-row.  Its
            # index is constant along j, so Pallas elides all but one DMA per
            # block-row.
            in_specs=[pl.BlockSpec((t, t), lambda i, j: (i, i))],
            # Output: clamp j < i onto the diagonal block; the block index does
            # not change until j == i, so nothing is written back for the
            # strictly-lower blocks (they stay as Z via the aliasing).
            out_specs=pl.BlockSpec((t, t), lambda i, j: (i, jnp.maximum(j, i))),
        ),
        # Output buffer aliases Z: untouched (strictly-lower) blocks keep Z's
        # values.  Correct whether or not the caller donates; donation makes it
        # truly in-place (no XLA defensive copy).
        input_output_aliases={0: 0},
        compiler_params=pltpu.CompilerParams(
            # Row axis sharded across v7x's two TensorCores; column axis stays
            # sequential per core to preserve DMA elision / output residency.
            dimension_semantics=("parallel", "arbitrary"),
            vmem_limit_bytes=48 << 20,
        ),
        cost_estimate=pl.CostEstimate(
            flops=n * n, transcendentals=0, bytes_accessed=bytes_accessed),
    )(z)


# Non-donating entry point (always safe to call).
l_plus = jax.jit(_l_plus_impl, static_argnames=("e",))
# Donating entry point: true in-place update, ~3x less HBM traffic.  The caller
# must not use Z afterwards.
l_plus_donate = jax.jit(_l_plus_impl, static_argnames=("e",), donate_argnums=0)


def l_plus_ref(z, e=0.01):
    """Pure-JAX reference (mirrors the PyTorch forward)."""
    return (jnp.tril(z, -1)
            + jnp.diag(jnp.abs(jnp.diag(z)))
            + jnp.asarray(e, z.dtype) * jnp.eye(z.shape[0], dtype=z.dtype))


if __name__ == "__main__":
    key = jax.random.PRNGKey(0)
    k_small, k_rag, k_big = jax.random.split(key, 3)

    # Small case matching the module's typical GP use (e.g. a 32x32 factor).
    # Exercises the single-full-block path.
    # TODO(synk): for the real N~32 workload, batch many matrices into one
    # lane-dense (B, N, N) kernel (or let XLA fuse it) instead of a per-matrix
    # pallas_call -- launch overhead and masked 32-lane stores dominate here.
    N_small = 32
    Z_small = jax.random.normal(k_small, (N_small, N_small), dtype=jnp.float32)
    ref_small = l_plus_ref(Z_small)
    out_small = l_plus(Z_small)
    jax.block_until_ready(out_small)
    assert out_small.shape == (N_small, N_small)
    assert jnp.allclose(out_small, ref_small, atol=1e-6, rtol=1e-6), \
        "mismatch vs reference (N=32)"

    # Ragged case (N not divisible by 128): exercises the cdiv grid + Pallas
    # block padding on edge tiles (2x2 grid of 128x128 tiles, partial edges).
    N_rag = 200
    Z_rag = jax.random.normal(k_rag, (N_rag, N_rag), dtype=jnp.float32)
    ref_rag = l_plus_ref(Z_rag)
    out_rag = l_plus(Z_rag)
    jax.block_until_ready(out_rag)
    assert jnp.allclose(out_rag, ref_rag, atol=1e-6, rtol=1e-6), \
        "mismatch vs reference (N=200, ragged)"

    # Larger divisible case: 2x2 grid of 512x512 tiles, exercises the
    # skip-lower / aliased in-place path with actual buffer donation.
    N_big = 1024
    Z_big = jax.random.normal(k_big, (N_big, N_big), dtype=jnp.float32)
    ref_big = l_plus_ref(Z_big)
    jax.block_until_ready(ref_big)
    out_big = l_plus_donate(Z_big)   # Z_big is donated; don't use it afterwards
    jax.block_until_ready(out_big)
    assert jnp.allclose(out_big, ref_big, atol=1e-6, rtol=1e-6), \
        "mismatch vs reference (N=1024, donated)"

    print("KERNEL_OK")
</pallas_src>

<mosaic_0001>
module attributes {stable_mosaic.version = 11 : i64} {
  func.func @_l_plus_kernel(%arg0: i32, %arg1: i32, %arg2: memref<32x32xf32, #tpu.memory_space<vmem>>, %arg3: memref<32x32xf32, #tpu.memory_space<vmem>>) attributes {dimension_semantics = [#tpu.dimension_semantics<parallel>, #tpu.dimension_semantics<arbitrary>], iteration_bounds = array<i64: 1, 1>, scalar_prefetch = 0 : i64, scratch_operands = 0 : i64, tpu.core_type = #tpu.core_type<tc>, window_params = [{transform_indices = @transform_0, window_bounds = array<i64: 32, 32>}, {transform_indices = @transform_1, window_bounds = array<i64: 32, 32>}]} {
    %0 = arith.cmpi sgt, %arg1, %arg0 : i32
    %1 = arith.extui %0 : i1 to i32
    %c0_i32 = arith.constant 0 : i32
    %2 = arith.cmpi ne, %1, %c0_i32 : i32
    scf.if %2 {
      %cst = arith.constant 0.000000e+00 : f32
      %6 = vector.broadcast %cst : f32 to vector<32x32xf32>
      %c0 = arith.constant 0 : index
      %c0_1 = arith.constant 0 : index
      %7 = vector.load %arg3[%c0, %c0_1] : memref<32x32xf32, #tpu.memory_space<vmem>>, vector<32x32xf32>
      tpu.vector_store %arg3[%c0, %c0_1], %6 {strides = array<i32>} : memref<32x32xf32, #tpu.memory_space<vmem>>, vector<32x32xf32>,
    } else {
    }
    %3 = arith.cmpi eq, %arg1, %arg0 : i32
    %4 = arith.extui %3 : i1 to i32
    %c0_i32_0 = arith.constant 0 : i32
    %5 = arith.cmpi ne, %4, %c0_i32_0 : i32
    scf.if %5 {
      %c0 = arith.constant 0 : index
      %c0_1 = arith.constant 0 : index
      %6 = vector.load %arg2[%c0, %c0_1] : memref<32x32xf32, #tpu.memory_space<vmem>>, vector<32x32xf32>
      %7 = tpu.iota {dimensions = array<i32: 0>} : vector<32x32xi32>
      %8 = tpu.iota {dimensions = array<i32: 1>} : vector<32x32xi32>
      %9 = math.absf %6 : vector<32x32xf32>
      %cst = arith.constant 0.00999999977 : f32
      %10 = vector.broadcast %cst : f32 to vector<32x32xf32>
      %11 = arith.addf %9, %10 : vector<32x32xf32>
      %12 = arith.cmpi sgt, %7, %8 : vector<32x32xi32>
      %13 = arith.cmpi eq, %7, %8 : vector<32x32xi32>
      %cst_2 = arith.constant 0.000000e+00 : f32
      %14 = vector.broadcast %cst_2 : f32 to vector<32x32xf32>
      %15 = arith.select %13, %11, %14 : vector<32x32xi1>, vector<32x32xf32>
      %16 = arith.select %12, %6, %15 : vector<32x32xi1>, vector<32x32xf32>
      %c0_3 = arith.constant 0 : index
      %c0_4 = arith.constant 0 : index
      %17 = vector.load %arg3[%c0_3, %c0_4] : memref<32x32xf32, #tpu.memory_space<vmem>>, vector<32x32xf32>
      tpu.vector_store %arg3[%c0_3, %c0_4], %16 {strides = array<i32>} : memref<32x32xf32, #tpu.memory_space<vmem>>, vector<32x32xf32>,
    } else {
    }
    return
  }
  func.func @transform_0(%arg0: i32, %arg1: i32) -> (i32, i32) {
    %c0_i32 = arith.constant 0 : i32
    return %arg0, %arg0 : i32, i32
  }
  func.func @transform_1(%arg0: i32, %arg1: i32) -> (i32, i32) {
    %0 = arith.maxsi %arg1, %arg0 : i32
    %c0_i32 = arith.constant 0 : i32
    return %arg0, %0 : i32, i32
  }
}

</mosaic_0001>

<bundles_post_ra>
// kernel: _l_plus_impl.1
= control target key start
LH: loop header
LB: loop body
LE: loop exit
PB: predicated region body
PF: predicated region fallthrough
CT: control target
= control target key end

     0   :  { %6 = vsyncpa [#allocation3], 0  ;;  %s196_s0 = inlined_call_operand.hbm [shape: f32[32,32], index: 0, kind: input, shape index: {}, may-alias: {0,1}]   ;;  %s197_s1 = inlined_call_operand.hbm [shape: f32[32,32], index: 1, kind: output, shape index: {}, may-alias: {0,1}]  }
   0x1   :  { %7 = vsyncpa [#allocation4], 0  ;;  %s145_s6 = smov [#allocation2]   ;;  %s97_s10 = scalar_lea.hbm %s196_s0, 512 }
   0x2   :  { %s13_s7 = sshll.u32 %s145_s6, 4  ;;  %p98_p0 = scmp.ne.s32.totalorder %s196_s0, %s97_s10  ;;  %s14_s7 = int_to_ptr.vmem [resolvable:$true] %s13_s7 }
   0x3   :  { %p101_p1 = scmp.lt.u32.totalorder %s97_s10, %s196_s0 }
   0x5   :  { %p103_p2 = pnand %p101_p1, %p98_p0 }
   0x7   :  { %106 = shalt.err (!%p103_p2)
}
   0x8   :  { %s107_s15 = scalar_lea.vmem %s14_s7, 512  ;;  %p112_p4 = scmp.lt.s32.totalorder %s14_s7, %s14_s7 }
   0x9   :  { %p108_p3 = scmp.ne.s32.totalorder %s14_s7, %s107_s15  ;;  %p113_p5 = scmp.lt.s32.totalorder %s107_s15, %s107_s15 }
   0xb   :  { %p114_p6 = por %p113_p5, %p112_p4 }
   0xd   :  { %p115_p7 = pnand %p114_p6, %p108_p3 }
   0xf   :  { %118 = shalt.err (!%p115_p7)
}
  0x10   :  { %s146_s16 = smov 128   ;;  %s147_s17 = smov 8  }
  0x11   :  { %19 = dma.hbm_to_vmem [thread:$0]  %s196_s0, 512, %s14_s7, [#allocation3], %s146_s16, %s146_s16, %s147_s17  }
  0x12   :  { %141 = dma.done.wait [#allocation3], 512  }
  0x13   :  { %142 = vsyncadd [#allocation3], 4294966784  ;;  %v40_v0 = vlaneseq  ;;  %v36_v5 = vld [vmem:[#allocation2] sm:$0xff]  ;;  %v37_v6 = vld [vmem:[#allocation2 + $0x8] sm:$0xff]  ;;  %vm71_vm6 = vcmask 261120   ;;  %s148_s0 = smov [#allocation5]  }
  0x14   :  { %v38_v7 = vld [vmem:[#allocation2 + $0x10] sm:$0xff]  ;;  %v47_v9 = vand.u32 2147483647, %v36_v5  ;;  %v48_v10 = vand.u32 2147483647, %v37_v6  ;;  %v39_v12 = vld [vmem:[#allocation2 + $0x18] sm:$0xff] }
  0x15   :  { %v41_v1 = vshrl.u32 %v40_v0, 7  ;;  %v46_v2 = vand.u32 127, %v40_v0  ;;  %v49_v11 = vand.u32 2147483647, %v38_v7  ;;  %v50_v16 = vand.u32 2147483647, %v39_v12 }
  0x16   :  { %v51_v13 = vadd.f32 0.01, %v47_v9  ;;  %v52_v14 = vadd.f32 0.01, %v48_v10  ;;  %s81_s20 = sshll.u32 %s148_s0, 4  ;;  %s82_s20 = int_to_ptr.vmem [resolvable:$true] %s81_s20 }
  0x17   :  { %v42_v3 = vadd.s32 8, %v41_v1  ;;  %v43_v4 = vadd.s32 16, %v41_v1  ;;  %v44_v8 = vadd.s32 24, %v41_v1  ;;  %vm55_vm0 = vcmp.gt.s32.totalorder %v41_v1, %v46_v2  ;;  %s119_s21 = scalar_lea.vmem %s82_s20, 512  ;;  %p124_p9 = scmp.lt.s32.totalorder %s82_s20, %s82_s20 }
  0x18   :  { %vm59_vm1 = vcmp.eq.s32.totalorder %v41_v1, %v46_v2  ;;  %v53_v15 = vadd.f32 0.01, %v49_v11  ;;  %v54_v23 = vadd.f32 0.01, %v50_v16  ;;  %p120_p8 = scmp.ne.s32.totalorder %s82_s20, %s119_s21  ;;  %p125_p10 = scmp.lt.s32.totalorder %s119_s21, %s119_s21 }
  0x19   :  { %vm56_vm2 = vcmp.gt.s32.totalorder %v42_v3, %v46_v2  ;;  %vm60_vm3 = vcmp.eq.s32.totalorder %v42_v3, %v46_v2  ;;  %vm61_vm4 = vcmp.eq.s32.totalorder %v43_v4, %v46_v2  ;;  %vm57_vm5 = vcmp.gt.s32.totalorder %v43_v4, %v46_v2 }
  0x1a   :  { %vm58_vm7 = vcmp.gt.s32.totalorder %v44_v8, %v46_v2  ;;  %v63_v17 = vsel %vm59_vm1, %v51_v13, 0.0  ;;  %v64_v18 = vsel %vm60_vm3, %v52_v14, 0.0  ;;  %v65_v19 = vsel %vm61_vm4, %v53_v15, 0.0  ;;  %p126_p11 = por %p125_p10, %p124_p9 }
  0x1b   :  { %vm62_vm8 = vcmp.eq.s32.totalorder %v44_v8, %v46_v2  ;;  %v67_v20 = vsel %vm55_vm0, %v36_v5, %v63_v17  ;;  %v68_v21 = vsel %vm56_vm2, %v37_v6, %v64_v18  ;;  %v69_v22 = vsel %vm57_vm5, %v38_v7, %v65_v19 }
  0x1c   :  { %72 = vst.msk [vmem:[#allocation5] sm:$0xff] %vm71_vm6, %v67_v20  ;;  %73 = vst.msk [vmem:[#allocation5 + $0x8] sm:$0xff] %vm71_vm6, %v68_v21  ;;  %v66_v24 = vsel %vm62_vm8, %v54_v23, 0.0  ;;  %p127_p12 = pnand %p126_p11, %p120_p8 }
  0x1d   :  { %74 = vst.msk [vmem:[#allocation5 + $0x10] sm:$0xff] %vm71_vm6, %v69_v22  ;;  %v70_v25 = vsel %vm58_vm7, %v39_v12, %v66_v24 }
  0x1e   :  { %75 = vst.msk [vmem:[#allocation5 + $0x18] sm:$0xff] %vm71_vm6, %v70_v25 }
  0x1f   :  { %130 = shalt.err (!%p127_p12)
}
  0x20   :  { %s131_s24 = scalar_lea.hbm %s197_s1, 512 }
  0x21   :  { %p132_p13 = scmp.ne.s32.totalorder %s197_s1, %s131_s24  ;;  %p135_p0 = scmp.lt.u32.totalorder %s131_s24, %s197_s1 }
  0x23   :  { %p137_p1 = pnand %p135_p0, %p132_p13 }
  0x25   :  { %140 = shalt.err (!%p137_p1)
}
  0x26   :  { %87 = dma.vmem_to_hbm [thread:$0]  %s82_s20, 512, %s197_s1, [#allocation4], %s146_s16, %s146_s16, %s147_s17  }
  0x27   :  { %143 = dma.done.wait [#allocation4], 512  }
  0x28   :  { %144 = vsyncadd [#allocation4], 4294966784 }
  0x29   :  { %91 = vsyncpa [#allocation3], 1 }
  0x2a   :  { %92 = vsyncpa [#allocation4], 1 }

</bundles_post_ra>
